<compile_context>
chip_gen: v6e
topology: v6e:2x2x1
jax: 0.10.0
libtpu: 0.0.40
codegen_flags: <defaults>
</compile_context>

<pallas_src>
import math

import jax
import jax.numpy as jnp
import numpy as np
from jax.experimental import pallas as pl
from jax.experimental.pallas import tpu as pltpu

# ---- model hyper-params (fixed by the PyTorch module) -----------------------
N_HIDDEN = 33            # Transformer.fc1 out features ("self.n = 33")
DIM_K = 4
DIM_V = 8
NUM_HEADS = 2
DK = DIM_K // NUM_HEADS  # 2
DV = DIM_V // NUM_HEADS  # 4
NUM_CLASSES = 2
_NORM_FACT = 1.0 / math.sqrt(DK)

assert NUM_HEADS == 2 and NUM_CLASSES == 2  # closed-form 2-way softmaxes below

_SQRT_2_OVER_PI = 0.7978845608028654
_GELU_C = 0.044715


def _gelu_tanh(x):
    # tanh-form GELU: |err| <= ~3e-4 vs exact erf GELU (F.gelu default).
    # tanh lowers to the EUP (its own VLIW slot), the poly is ~5 VALU FMAs,
    # vs ~18 VALU ops + exp + divide for the A&S erf form used previously.
    return 0.5 * x * (1.0 + jnp.tanh(_SQRT_2_OVER_PI * (x + _GELU_C * x * x * x)))


def trans_kernel(x_ref, w1_ref, b1_ref, wqkv_ref, w5d_ref, o_ref):
    # Everything is in transposed (features, TB) layout; TB sits on the lanes.

    # --- fc1 + GELU (MXU accumulates in f32 even if inputs are bf16) --------
    x1 = jnp.dot(w1_ref[...], x_ref[...], preferred_element_type=jnp.float32)
    x1 = _gelu_tanh(x1 + b1_ref[...])                       # (33, TB) f32
    # nn.Dropout(0.08): identity at inference.

    # --- fused q | dup(k1-k0) | v projection ---------------------------------
    # Host folds: wq pre-scaled by 1/sqrt(dk); k replaced by kdiff = k_head1 -
    # k_head0, duplicated so rows 4:8 line up 1:1 with the head-major q rows;
    # v rows 8:16 land on a sublane-aligned group.
    qkv = jnp.dot(wqkv_ref[...], x1, preferred_element_type=jnp.float32)  # (16, TB)
    prod = qkv[0:4] * qkv[4:8]          # rows: q_h[d] * kdiff[d], head-major
    v0 = qkv[8:12]                      # head-0 values (4, TB)
    v1 = qkv[12:16]                     # head-1 values (4, TB)
    vd = v0 - v1                        # shared across both heads

    # --- MultiHeadSelfAttention (nh=2): per-head 2-way softmax, closed form --
    ga = []
    for h in range(NUM_HEADS):
        d_h = prod[2 * h:2 * h + 1] + prod[2 * h + 1:2 * h + 2]  # (1,TB) = s_h1-s_h0
        w0 = pl.reciprocal(1.0 + jnp.exp(d_h), approx=True)      # softmax weight on v0
        # att_h = w0*v0 + (1-w0)*v1 = v1 + w0*(v0-v1); GELU is elementwise.
        ga.append(_gelu_tanh(v1 + w0 * vd))                      # (4, TB)

    # --- fc5 + F.softmax over the 2 classes, collapsed to one logit diff -----
    # x3[0]-x3[1] = sum_j (W5[j,0]-W5[j,1]) * att_flat[j] + (b5[0]-b5[1]),
    # with att_flat[2d+h] = att[head h][dim d] (the transpose(1,2).reshape).
    # w5d_ref (SMEM, f32[9]) holds the 8 weight diffs + the bias diff, so fc5
    # is 8 scalar-vector FMAs on (1,TB) rows — no MXU push, no MRF pops.
    acc = w5d_ref[8] + w5d_ref[0] * ga[0][0:1, :] + w5d_ref[1] * ga[1][0:1, :]
    for d in range(1, DV):
        acc = (acc
               + w5d_ref[2 * d] * ga[0][d:d + 1, :]
               + w5d_ref[2 * d + 1] * ga[1][d:d + 1, :])
    p0 = pl.reciprocal(1.0 + jnp.exp(-acc), approx=True)     # softmax(x3)[0]
    o_ref[0:1, :] = p0
    o_ref[1:2, :] = 1.0 - p0


def init_params(n_input, key):
    """Deterministic parameter init mirroring nn.Linear defaults
    (uniform(-1/sqrt(fan_in), 1/sqrt(fan_in))). Weights stored as (in, out)."""
    def linear(k, fan_in, fan_out, bias=True):
        bound = 1.0 / math.sqrt(fan_in)
        kw, kb = jax.random.split(k)
        w = jax.random.uniform(kw, (fan_in, fan_out), jnp.float32, -bound, bound)
        b = (jax.random.uniform(kb, (fan_out,), jnp.float32, -bound, bound)
             if bias else None)
        return w, b

    k1, k2, k3, k4, k5 = jax.random.split(key, 5)
    w1, b1 = linear(k1, n_input, N_HIDDEN)            # fc1
    wq, _ = linear(k2, N_HIDDEN, DIM_K, bias=False)   # linear_q
    wk, _ = linear(k3, N_HIDDEN, DIM_K, bias=False)   # linear_k
    wv, _ = linear(k4, N_HIDDEN, DIM_V, bias=False)   # linear_v
    w5, b5 = linear(k5, DIM_V, NUM_CLASSES)           # fc5
    return dict(w1=w1, b1=b1, wq=wq, wk=wk, wv=wv, w5=w5, b5=b5)


def _round_up(a, m):
    return ((a + m - 1) // m) * m


def _cdiv(a, b):
    return -(-a // b)


def trans_model_forward(x, params, *, batch_tile=4096, input_dtype=jnp.float32,
                        min_grid_steps=2):
    """TransModel forward via a lane-dense, batch-tiled Pallas kernel.

    batch_tile: lanes per grid step (rounded to 128).  Default 4096 keeps the
      ~0.35us per-grid-step overhead well below the per-tile work; sweep up to
      8192-16384 for very large batches.  The tile is automatically capped so
      there are at least `min_grid_steps` grid steps (keeps both v7x
      TensorCores busy on the "parallel" batch axis).
    input_dtype: jnp.bfloat16 halves x/w1 HBM traffic on v5e/v6e/v7x (fc1 MXU
      takes bf16 with f32 accumulation; all elementwise math stays f32, which
      keeps v5e safe).  Default f32 matches PyTorch numerics.
    """
    B, n_input = x.shape
    f32 = jnp.float32

    # ---- batch tile / grid ---------------------------------------------------
    b_min = _round_up(B, 128)
    tb = min(_round_up(max(batch_tile, 128), 128), b_min)
    if b_min >= min_grid_steps * 128:
        # Keep >= min_grid_steps tiles so the parallel axis can be sharded.
        tb = min(tb, _round_up(_cdiv(b_min, min_grid_steps), 128))
    b_pad = _round_up(B, tb)
    grid = (b_pad // tb,)

    # ---- host-side weight prep (one-time layout plumbing) -------------------
    w1_t = params["w1"].T.astype(input_dtype)                       # (33, n_input)
    b1 = params["b1"].astype(f32).reshape(N_HIDDEN, 1)              # (33, 1)

    wq_t = (params["wq"] * _NORM_FACT).T.astype(f32)                # (4, 33) head-major
    wk_t = params["wk"].T.astype(f32)                               # (4, 33)
    kdiff = wk_t[DK:2 * DK] - wk_t[0:DK]                            # (2, 33) k1 - k0
    kdiff_dup = jnp.concatenate([kdiff, kdiff], axis=0)             # (4, 33)
    wv_t = params["wv"].T.astype(f32)                               # (8, 33) head-major
    wqkv_t = jnp.concatenate([wq_t, kdiff_dup, wv_t], axis=0)       # (16, 33)

    w5 = params["w5"].astype(f32)                                   # (8, 2)
    b5 = params["b5"].astype(f32)                                   # (2,)
    w5d = jnp.concatenate([w5[:, 0] - w5[:, 1],                     # 8 weight diffs
                           (b5[0] - b5[1]).reshape(1)]).astype(f32) # + bias diff -> (9,)

    # Lane-dense input slab: (n_input, B_pad), zero-padded along batch.
    x_t = jnp.pad(x, ((0, b_pad - B), (0, 0))).T.astype(input_dtype)

    args = (x_t, w1_t, b1, wqkv_t, w5d)

    # ---- VMEM budget (explicit cap: v7x has 64 MiB physical / 32 MiB default)
    in_tile_bytes = n_input * tb * jnp.dtype(input_dtype).itemsize
    out_tile_bytes = NUM_CLASSES * tb * 4
    w_bytes = sum(int(a.size) * a.dtype.itemsize for a in (w1_t, b1, wqkv_t, w5d))
    live_bytes = 96 * tb * 4          # generous bound on f32 intermediates/tile
    vmem_needed = 2 * in_tile_bytes + 2 * out_tile_bytes + w_bytes + live_bytes
    vmem_limit = int(min(max(2 * vmem_needed, 32 << 20), 64 << 20))

    # Advisory cost estimate so XLA schedules around the custom call sensibly.
    flops_per_col = (2 * (n_input * N_HIDDEN + N_HIDDEN * 16)
                     + 8 * (N_HIDDEN + DIM_V)      # gelu poly
                     + 40                          # attention + fc5 FMAs
                     )
    transc_per_col = (N_HIDDEN + DIM_V) + (NUM_HEADS + 1) + (NUM_HEADS + 1)
    bytes_accessed = (sum(int(a.size) * a.dtype.itemsize for a in args)
                      + b_pad * NUM_CLASSES * 4)
    cost = pl.CostEstimate(flops=int(flops_per_col) * b_pad,
                           transcendentals=int(transc_per_col) * b_pad,
                           bytes_accessed=int(bytes_accessed))

    out_t = pl.pallas_call(
        trans_kernel,
        out_shape=jax.ShapeDtypeStruct((NUM_CLASSES, b_pad), jnp.float32),
        grid=grid,
        in_specs=[
            pl.BlockSpec((n_input, tb), lambda i: (0, i)),     # x: batch-tiled
            pl.BlockSpec(w1_t.shape, lambda i: (0, 0)),        # weights resident
            pl.BlockSpec(b1.shape, lambda i: (0, 0)),
            pl.BlockSpec(wqkv_t.shape, lambda i: (0, 0)),
            pl.BlockSpec(memory_space=pltpu.MemorySpace.SMEM), # fc5 scalar diffs
        ],
        out_specs=pl.BlockSpec((NUM_CLASSES, tb), lambda i: (0, i)),
        compiler_params=pltpu.CompilerParams(
            dimension_semantics=("parallel",),   # v7x: shard tiles over 2 TCs
            vmem_limit_bytes=vmem_limit),
        cost_estimate=cost,
    )(*args)

    return out_t[:, :B].T                                      # (B, 2)


def trans_model_reference(x, params):
    """Pure-JAX reference matching the PyTorch forward (eval mode, exact GELU)."""
    B = x.shape[0]
    x1 = jax.nn.gelu(x @ params["w1"] + params["b1"], approximate=False)
    q = (x1 @ params["wq"]).reshape(B, NUM_HEADS, DK)
    k = (x1 @ params["wk"]).reshape(B, NUM_HEADS, DK)
    v = (x1 @ params["wv"]).reshape(B, NUM_HEADS, DV)
    dist = jnp.einsum("bhd,bgd->bhg", q, k) * _NORM_FACT
    dist = jax.nn.softmax(dist, axis=-1)
    att = jnp.einsum("bhg,bgd->bhd", dist, v)
    att = jnp.transpose(att, (0, 2, 1)).reshape(B, DIM_V)
    att = jax.nn.gelu(att, approximate=False)
    x3 = att @ params["w5"] + params["b5"]
    return jax.nn.softmax(x3, axis=1)


if __name__ == "__main__":
    N_INPUT = 16
    BATCH = 8

    key = jax.random.PRNGKey(0)
    k_param, k_x = jax.random.split(key)
    params = init_params(N_INPUT, k_param)

    # Small-batch run (single grid step, padded to one 128-lane tile).
    x = jax.random.normal(k_x, (BATCH, N_INPUT), dtype=jnp.float32)
    out = jax.block_until_ready(trans_model_forward(x, params))
    assert out.shape == (BATCH, NUM_CLASSES)
    ref = jax.block_until_ready(trans_model_reference(x, params))
    np.testing.assert_allclose(np.asarray(out), np.asarray(ref), atol=5e-3, rtol=0)

    # Multi-tile runs: default tile (auto-capped to >=2 grid steps) and a
    # forced 128-wide tile to exercise the batch-tiled "parallel" grid+padding.
    x2 = jax.random.normal(jax.random.PRNGKey(1), (320, N_INPUT), dtype=jnp.float32)
    ref2 = jax.block_until_ready(trans_model_reference(x2, params))
    out2 = jax.block_until_ready(trans_model_forward(x2, params))
    np.testing.assert_allclose(np.asarray(out2), np.asarray(ref2), atol=5e-3, rtol=0)
    out3 = jax.block_until_ready(trans_model_forward(x2, params, batch_tile=128))
    np.testing.assert_allclose(np.asarray(out3), np.asarray(ref2), atol=5e-3, rtol=0)

    print("KERNEL_OK")
</pallas_src>

<mosaic_0001>
module attributes {stable_mosaic.version = 11 : i64} {
  func.func @trans_kernel(%arg0: i32, %arg1: memref<16x128xf32, #tpu.memory_space<vmem>>, %arg2: memref<33x16xf32, #tpu.memory_space<vmem>>, %arg3: memref<33x1xf32, #tpu.memory_space<vmem>>, %arg4: memref<16x33xf32, #tpu.memory_space<vmem>>, %arg5: memref<9xf32, #tpu.memory_space<smem>>, %arg6: memref<2x128xf32, #tpu.memory_space<vmem>>) attributes {dimension_semantics = [#tpu.dimension_semantics<parallel>], iteration_bounds = array<i64: 1>, scalar_prefetch = 0 : i64, scratch_operands = 0 : i64, tpu.core_type = #tpu.core_type<tc>, window_params = [{transform_indices = @transform_0, window_bounds = array<i64: 16, 128>}, {pipeline_mode = #tpu.pipeline_mode<synchronous>, transform_indices = @transform_1, window_bounds = array<i64: 33, 16>}, {pipeline_mode = #tpu.pipeline_mode<synchronous>, transform_indices = @transform_2, window_bounds = array<i64: 33, 1>}, {pipeline_mode = #tpu.pipeline_mode<synchronous>, transform_indices = @transform_3, window_bounds = array<i64: 16, 33>}, {transform_indices = @transform_4, window_bounds = array<i64: 9>}, {transform_indices = @transform_5, window_bounds = array<i64: 2, 128>}]} {
    %c0 = arith.constant 0 : index
    %c0_0 = arith.constant 0 : index
    %0 = vector.load %arg2[%c0, %c0_0] : memref<33x16xf32, #tpu.memory_space<vmem>>, vector<33x16xf32>
    %c0_1 = arith.constant 0 : index
    %c0_2 = arith.constant 0 : index
    %1 = vector.load %arg1[%c0_1, %c0_2] : memref<16x128xf32, #tpu.memory_space<vmem>>, vector<16x128xf32>
    %cst = arith.constant dense<0.000000e+00> : vector<33x128xf32>
    %2 = tpu.matmul %0, %1, %cst {dimension_numbers = #tpu.dot_dimension_numbers<[1], [0], [0], [1], [0, 0, 1, 1], [], []>} : vector<33x16xf32>, vector<16x128xf32>, vector<33x128xf32> -> vector<33x128xf32>
    %c0_3 = arith.constant 0 : index
    %c0_4 = arith.constant 0 : index
    %3 = vector.load %arg3[%c0_3, %c0_4] : memref<33x1xf32, #tpu.memory_space<vmem>>, vector<33x1xf32>
    %4 = vector.broadcast %3 : vector<33x1xf32> to vector<33x128xf32>
    %5 = arith.addf %2, %4 : vector<33x128xf32>
    %cst_5 = arith.constant 5.000000e-01 : f32
    %6 = vector.broadcast %cst_5 : f32 to vector<33x128xf32>
    %7 = arith.mulf %6, %5 : vector<33x128xf32>
    %cst_6 = arith.constant 4.471500e-02 : f32
    %8 = vector.broadcast %cst_6 : f32 to vector<33x128xf32>
    %9 = arith.mulf %8, %5 : vector<33x128xf32>
    %10 = arith.mulf %9, %5 : vector<33x128xf32>
    %11 = arith.mulf %10, %5 : vector<33x128xf32>
    %12 = arith.addf %5, %11 : vector<33x128xf32>
    %cst_7 = arith.constant 0.797884583 : f32
    %13 = vector.broadcast %cst_7 : f32 to vector<33x128xf32>
    %14 = arith.mulf %13, %12 : vector<33x128xf32>
    %15 = math.tanh %14 : vector<33x128xf32>
    %cst_8 = arith.constant 1.000000e+00 : f32
    %16 = vector.broadcast %cst_8 : f32 to vector<33x128xf32>
    %17 = arith.addf %16, %15 : vector<33x128xf32>
    %18 = arith.mulf %7, %17 : vector<33x128xf32>
    %c0_9 = arith.constant 0 : index
    %c0_10 = arith.constant 0 : index
    %19 = vector.load %arg4[%c0_9, %c0_10] : memref<16x33xf32, #tpu.memory_space<vmem>>, vector<16x33xf32>
    %cst_11 = arith.constant dense<0.000000e+00> : vector<16x128xf32>
    %20 = tpu.matmul %19, %18, %cst_11 {dimension_numbers = #tpu.dot_dimension_numbers<[1], [0], [0], [1], [0, 0, 1, 1], [], []>} : vector<16x33xf32>, vector<33x128xf32>, vector<16x128xf32> -> vector<16x128xf32>
    %21 = vector.extract_strided_slice %20 {offsets = [0, 0], sizes = [4, 128], strides = [1, 1]} : vector<16x128xf32> to vector<4x128xf32>
    %22 = vector.extract_strided_slice %20 {offsets = [4, 0], sizes = [4, 128], strides = [1, 1]} : vector<16x128xf32> to vector<4x128xf32>
    %23 = arith.mulf %21, %22 : vector<4x128xf32>
    %24 = vector.extract_strided_slice %20 {offsets = [8, 0], sizes = [4, 128], strides = [1, 1]} : vector<16x128xf32> to vector<4x128xf32>
    %25 = vector.extract_strided_slice %20 {offsets = [12, 0], sizes = [4, 128], strides = [1, 1]} : vector<16x128xf32> to vector<4x128xf32>
    %26 = arith.subf %24, %25 : vector<4x128xf32>
    %27 = vector.extract_strided_slice %23 {offsets = [0, 0], sizes = [1, 128], strides = [1, 1]} : vector<4x128xf32> to vector<1x128xf32>
    %28 = vector.extract_strided_slice %23 {offsets = [1, 0], sizes = [1, 128], strides = [1, 1]} : vector<4x128xf32> to vector<1x128xf32>
    %29 = arith.addf %27, %28 : vector<1x128xf32>
    %30 = math.exp %29 : vector<1x128xf32>
    %cst_12 = arith.constant 1.000000e+00 : f32
    %31 = vector.broadcast %cst_12 : f32 to vector<1x128xf32>
    %32 = arith.addf %31, %30 : vector<1x128xf32>
    %33 = tpu.reciprocal %32 {approx = true} : vector<1x128xf32> -> vector<1x128xf32>
    %34 = vector.broadcast %33 : vector<1x128xf32> to vector<4x128xf32>
    %35 = arith.mulf %34, %26 : vector<4x128xf32>
    %36 = arith.addf %25, %35 : vector<4x128xf32>
    %cst_13 = arith.constant 5.000000e-01 : f32
    %37 = vector.broadcast %cst_13 : f32 to vector<4x128xf32>
    %38 = arith.mulf %37, %36 : vector<4x128xf32>
    %cst_14 = arith.constant 4.471500e-02 : f32
    %39 = vector.broadcast %cst_14 : f32 to vector<4x128xf32>
    %40 = arith.mulf %39, %36 : vector<4x128xf32>
    %41 = arith.mulf %40, %36 : vector<4x128xf32>
    %42 = arith.mulf %41, %36 : vector<4x128xf32>
    %43 = arith.addf %36, %42 : vector<4x128xf32>
    %cst_15 = arith.constant 0.797884583 : f32
    %44 = vector.broadcast %cst_15 : f32 to vector<4x128xf32>
    %45 = arith.mulf %44, %43 : vector<4x128xf32>
    %46 = math.tanh %45 : vector<4x128xf32>
    %cst_16 = arith.constant 1.000000e+00 : f32
    %47 = vector.broadcast %cst_16 : f32 to vector<4x128xf32>
    %48 = arith.addf %47, %46 : vector<4x128xf32>
    %49 = arith.mulf %38, %48 : vector<4x128xf32>
    %50 = vector.extract_strided_slice %23 {offsets = [2, 0], sizes = [1, 128], strides = [1, 1]} : vector<4x128xf32> to vector<1x128xf32>
    %51 = vector.extract_strided_slice %23 {offsets = [3, 0], sizes = [1, 128], strides = [1, 1]} : vector<4x128xf32> to vector<1x128xf32>
    %52 = arith.addf %50, %51 : vector<1x128xf32>
    %53 = math.exp %52 : vector<1x128xf32>
    %cst_17 = arith.constant 1.000000e+00 : f32
    %54 = vector.broadcast %cst_17 : f32 to vector<1x128xf32>
    %55 = arith.addf %54, %53 : vector<1x128xf32>
    %56 = tpu.reciprocal %55 {approx = true} : vector<1x128xf32> -> vector<1x128xf32>
    %57 = vector.broadcast %56 : vector<1x128xf32> to vector<4x128xf32>
    %58 = arith.mulf %57, %26 : vector<4x128xf32>
    %59 = arith.addf %25, %58 : vector<4x128xf32>
    %cst_18 = arith.constant 5.000000e-01 : f32
    %60 = vector.broadcast %cst_18 : f32 to vector<4x128xf32>
    %61 = arith.mulf %60, %59 : vector<4x128xf32>
    %cst_19 = arith.constant 4.471500e-02 : f32
    %62 = vector.broadcast %cst_19 : f32 to vector<4x128xf32>
    %63 = arith.mulf %62, %59 : vector<4x128xf32>
    %64 = arith.mulf %63, %59 : vector<4x128xf32>
    %65 = arith.mulf %64, %59 : vector<4x128xf32>
    %66 = arith.addf %59, %65 : vector<4x128xf32>
    %cst_20 = arith.constant 0.797884583 : f32
    %67 = vector.broadcast %cst_20 : f32 to vector<4x128xf32>
    %68 = arith.mulf %67, %66 : vector<4x128xf32>
    %69 = math.tanh %68 : vector<4x128xf32>
    %cst_21 = arith.constant 1.000000e+00 : f32
    %70 = vector.broadcast %cst_21 : f32 to vector<4x128xf32>
    %71 = arith.addf %70, %69 : vector<4x128xf32>
    %72 = arith.mulf %61, %71 : vector<4x128xf32>
    %c8 = arith.constant 8 : index
    %73 = memref.load %arg5[%c8] : memref<9xf32, #tpu.memory_space<smem>>
    %c0_22 = arith.constant 0 : index
    %74 = memref.load %arg5[%c0_22] : memref<9xf32, #tpu.memory_space<smem>>
    %75 = vector.extract_strided_slice %49 {offsets = [0, 0], sizes = [1, 128], strides = [1, 1]} : vector<4x128xf32> to vector<1x128xf32>
    %76 = vector.broadcast %74 : f32 to vector<1x128xf32>
    %77 = arith.mulf %76, %75 : vector<1x128xf32>
    %78 = vector.broadcast %73 : f32 to vector<1x128xf32>
    %79 = arith.addf %78, %77 : vector<1x128xf32>
    %c1 = arith.constant 1 : index
    %80 = memref.load %arg5[%c1] : memref<9xf32, #tpu.memory_space<smem>>
    %81 = vector.extract_strided_slice %72 {offsets = [0, 0], sizes = [1, 128], strides = [1, 1]} : vector<4x128xf32> to vector<1x128xf32>
    %82 = vector.broadcast %80 : f32 to vector<1x128xf32>
    %83 = arith.mulf %82, %81 : vector<1x128xf32>
    %84 = arith.addf %79, %83 : vector<1x128xf32>
    %c2 = arith.constant 2 : index
    %85 = memref.load %arg5[%c2] : memref<9xf32, #tpu.memory_space<smem>>
    %86 = vector.extract_strided_slice %49 {offsets = [1, 0], sizes = [1, 128], strides = [1, 1]} : vector<4x128xf32> to vector<1x128xf32>
    %87 = vector.broadcast %85 : f32 to vector<1x128xf32>
    %88 = arith.mulf %87, %86 : vector<1x128xf32>
    %89 = arith.addf %84, %88 : vector<1x128xf32>
    %c3 = arith.constant 3 : index
    %90 = memref.load %arg5[%c3] : memref<9xf32, #tpu.memory_space<smem>>
    %91 = vector.extract_strided_slice %72 {offsets = [1, 0], sizes = [1, 128], strides = [1, 1]} : vector<4x128xf32> to vector<1x128xf32>
    %92 = vector.broadcast %90 : f32 to vector<1x128xf32>
    %93 = arith.mulf %92, %91 : vector<1x128xf32>
    %94 = arith.addf %89, %93 : vector<1x128xf32>
    %c4 = arith.constant 4 : index
    %95 = memref.load %arg5[%c4] : memref<9xf32, #tpu.memory_space<smem>>
    %96 = vector.extract_strided_slice %49 {offsets = [2, 0], sizes = [1, 128], strides = [1, 1]} : vector<4x128xf32> to vector<1x128xf32>
    %97 = vector.broadcast %95 : f32 to vector<1x128xf32>
    %98 = arith.mulf %97, %96 : vector<1x128xf32>
    %99 = arith.addf %94, %98 : vector<1x128xf32>
    %c5 = arith.constant 5 : index
    %100 = memref.load %arg5[%c5] : memref<9xf32, #tpu.memory_space<smem>>
    %101 = vector.extract_strided_slice %72 {offsets = [2, 0], sizes = [1, 128], strides = [1, 1]} : vector<4x128xf32> to vector<1x128xf32>
    %102 = vector.broadcast %100 : f32 to vector<1x128xf32>
    %103 = arith.mulf %102, %101 : vector<1x128xf32>
    %104 = arith.addf %99, %103 : vector<1x128xf32>
    %c6 = arith.constant 6 : index
    %105 = memref.load %arg5[%c6] : memref<9xf32, #tpu.memory_space<smem>>
    %106 = vector.extract_strided_slice %49 {offsets = [3, 0], sizes = [1, 128], strides = [1, 1]} : vector<4x128xf32> to vector<1x128xf32>
    %107 = vector.broadcast %105 : f32 to vector<1x128xf32>
    %108 = arith.mulf %107, %106 : vector<1x128xf32>
    %109 = arith.addf %104, %108 : vector<1x128xf32>
    %c7 = arith.constant 7 : index
    %110 = memref.load %arg5[%c7] : memref<9xf32, #tpu.memory_space<smem>>
    %111 = vector.extract_strided_slice %72 {offsets = [3, 0], sizes = [1, 128], strides = [1, 1]} : vector<4x128xf32> to vector<1x128xf32>
    %112 = vector.broadcast %110 : f32 to vector<1x128xf32>
    %113 = arith.mulf %112, %111 : vector<1x128xf32>
    %114 = arith.addf %109, %113 : vector<1x128xf32>
    %cst_23 = arith.constant 0.000000e+00 : f32
    %115 = vector.broadcast %cst_23 : f32 to vector<1x128xf32>
    %116 = arith.subf %115, %114 : vector<1x128xf32>
    %117 = math.exp %116 : vector<1x128xf32>
    %cst_24 = arith.constant 1.000000e+00 : f32
    %118 = vector.broadcast %cst_24 : f32 to vector<1x128xf32>
    %119 = arith.addf %118, %117 : vector<1x128xf32>
    %120 = tpu.reciprocal %119 {approx = true} : vector<1x128xf32> -> vector<1x128xf32>
    %c0_25 = arith.constant 0 : index
    %c0_26 = arith.constant 0 : index
    %121 = vector.load %arg6[%c0_25, %c0_26] : memref<2x128xf32, #tpu.memory_space<vmem>>, vector<1x128xf32>
    tpu.vector_store %arg6[%c0_25, %c0_26], %120 {strides = array<i32>} : memref<2x128xf32, #tpu.memory_space<vmem>>, vector<1x128xf32>,
    %cst_27 = arith.constant 1.000000e+00 : f32
    %122 = vector.broadcast %cst_27 : f32 to vector<1x128xf32>
    %123 = arith.subf %122, %120 : vector<1x128xf32>
    %c1_28 = arith.constant 1 : index
    %c0_29 = arith.constant 0 : index
    %124 = vector.load %arg6[%c1_28, %c0_29] : memref<2x128xf32, #tpu.memory_space<vmem>>, vector<1x128xf32>
    tpu.vector_store %arg6[%c1_28, %c0_29], %123 {strides = array<i32>} : memref<2x128xf32, #tpu.memory_space<vmem>>, vector<1x128xf32>,
    return
  }
  func.func @transform_0(%arg0: i32) -> (i32, i32) {
    %c0_i32 = arith.constant 0 : i32
    %c0_i32_0 = arith.constant 0 : i32
    return %c0_i32, %arg0 : i32, i32
  }
  func.func @transform_1(%arg0: i32) -> (i32, i32) {
    %c0_i32 = arith.constant 0 : i32
    %c0_i32_0 = arith.constant 0 : i32
    %c0_i32_1 = arith.constant 0 : i32
    return %c0_i32, %c0_i32_0 : i32, i32
  }
  func.func @transform_2(%arg0: i32) -> (i32, i32) {
    %c0_i32 = arith.constant 0 : i32
    %c0_i32_0 = arith.constant 0 : i32
    %c0_i32_1 = arith.constant 0 : i32
    return %c0_i32, %c0_i32_0 : i32, i32
  }
  func.func @transform_3(%arg0: i32) -> (i32, i32) {
    %c0_i32 = arith.constant 0 : i32
    %c0_i32_0 = arith.constant 0 : i32
    %c0_i32_1 = arith.constant 0 : i32
    return %c0_i32, %c0_i32_0 : i32, i32
  }
  func.func @transform_4(%arg0: i32) -> i32 {
    %c0_i32 = arith.constant 0 : i32
    %c0_i32_0 = arith.constant 0 : i32
    return %c0_i32 : i32
  }
  func.func @transform_5(%arg0: i32) -> (i32, i32) {
    %c0_i32 = arith.constant 0 : i32
    %c0_i32_0 = arith.constant 0 : i32
    return %c0_i32, %arg0 : i32, i32
  }
}

</mosaic_0001>

<bundles_post_ra>
// kernel: tpu_custom_call.1
= control target key start
LH: loop header
LB: loop body
LE: loop exit
PB: predicated region body
PF: predicated region fallthrough
CT: control target
= control target key end

     0   :  { %10 = vsyncpa [#allocation4], 0  ;;  %s666_s0 = inlined_call_operand.vmem [shape: f32[16,128], index: 0, kind: input, shape index: {}]   ;;  %s667_s1 = inlined_call_operand.vmem [shape: f32[33,16], index: 1, kind: input, shape index: {}]   ;;  %s668_s2 = inlined_call_operand.vmem [shape: f32[33,1], index: 2, kind: input, shape index: {}]   ;;  %s669_s3 = inlined_call_operand.vmem [shape: f32[16,33], index: 3, kind: input, shape index: {}]   ;;  %s670_s4 = inlined_call_operand.vmem [shape: f32[9], index: 4, kind: input, shape index: {}]   ;;  %s671_s5 = inlined_call_operand.hbm [shape: f32[2,128], index: 5, kind: output, shape index: {}]  }
   0x1   :  { %11 = vsyncpa [#allocation3], 0  ;;  %s26_s20 = sshll.u32 %s670_s4, 4  ;;  %s27_s20 = int_to_ptr.vmem [resolvable:$true] %s26_s20 }
   0x2   :  { %s528_s21 = scalar_lea.vmem %s27_s20, 16  ;;  %p533_p1 = scmp.lt.s32.totalorder %s27_s20, %s27_s20 }
   0x3   :  { %p529_p0 = scmp.ne.s32.totalorder %s27_s20, %s528_s21  ;;  %p534_p2 = scmp.lt.s32.totalorder %s528_s21, %s528_s21 }
   0x5   :  { %p535_p3 = por %p534_p2, %p533_p1 }
   0x7   :  { %p536_p4 = pnand %p535_p3, %p529_p0 }
   0x9   :  { %539 = shalt.err (!%p536_p4)
}
   0xa   :  { %s564_s22 = smov [#allocation2]  }
   0xb   :  { %29 = dma.vmem_to_smem %s27_s20, 16, %s564_s22, [#allocation4]  }
   0xc   :  { %560 = dma.done.wait [#allocation4], 16  }
   0xd   :  { %561 = vsyncadd [#allocation4], 4294967280 }
   0xe   :  { %33 = sfence }
   0xf   :  { %v40_v0 = vld [vmem:[%s666_s0 + $0x8] sm:$0xff]  ;;  %v565_v1 = vmov 0.0   ;;  %v39_v2 = vld [vmem:[%s666_s0] sm:$0xff]  ;;  %vm566_vm0 = vmmov 0   ;;  %vm71_vm1 = vcmask 130048   ;;  %v567_v4 = vmov 0  }
  0x10   :  { %467 = vmatprep.subr.mxu0 %v565_v1  ;;  %471 = vmatprep.mubr.msk.f32.mxu0 %vm566_vm0, %v565_v1  ;;  %v34_v3 = vld [vmem:[%s667_s1] sm:$0xff]  ;;  %v43_v6 = vld [vmem:[%s668_s2 + $0x10] sm:$0xff]  ;;  %v44_v7 = vld [vmem:[%s668_s2 + $0x18] sm:$0xff]  ;;  %vm224_vm2 = vcmask 269312   ;;  %vm231_vm3 = vcmask 1040384   ;;  %s446_s22 = sld [smem:[#allocation2 + $0x1]] }
  0x11   :  { %468 = vmatpush3.msra.mxu0 %v40_v0  ;;  %504 = vset.pattern.permute.xlu0 %v567_v4  ;;  %v45_v5 = vld [vmem:[%s668_s2 + $0x20] sm:$0x1]  ;;  %v35_v8 = vld [vmem:[%s667_s1 + $0x8] sm:$0xff]  ;;  %v36_v11 = vld [vmem:[%s667_s1 + $0x10] sm:$0xff]  ;;  %s447_s23 = sld [smem:[#allocation2 + $0x2]]  ;;  %s568_s29 = smov [#allocation5]  }
  0x12   :  { %469 = vmatprep.subr.mxu0 %v565_v1  ;;  %68 = vperm.xlu0 %504, %v45_v5   ;;  %v42_v9 = vld [vmem:[%s668_s2 + $0x8] sm:$0xff]  ;;  %v41_v10 = vld [vmem:[%s668_s2] sm:$0xff]  ;;  %v37_v12 = vld [vmem:[%s667_s1 + $0x18] sm:$0xff]  ;;  %s445_s24 = sld [smem:[#allocation2 + $0x8]]  ;;  %s428_s30 = sshll.u32 %s568_s29, 4  ;;  %s429_s30 = int_to_ptr.vmem [resolvable:$true] %s428_s30 }
  0x13   :  { %470 = vmatpush3.msra.mxu0 %v39_v2  ;;  %505 = vset.pattern.permute.xlu1 %v567_v4  ;;  %v38_v13 = vld [vmem:[%s667_s1 + $0x20] sm:$0x1]  ;;  %s448_s4 = sld [smem:[#allocation2 + $0x3]]  ;;  %s540_s6 = scalar_lea.vmem %s429_s30, 32 }
  0x14   :  { %472 = vmatmul.mubr.msk.f32.vlgmr.msra.gmra.mxu0 %vm71_vm1, %v34_v3  ;;  %58 = vperm.xlu1 %505, %v43_v6   ;;  %v222_v14 = vld [vmem:[%s669_s3] sm:$0xff]  ;;  %s449_s25 = sld [smem:[#allocation2 + $0x4]]  ;;  %p541_p5 = scmp.ne.s32.totalorder %s429_s30, %s540_s6 }
  0x15   :  { %474 = vmatprep.mubr.msk.f32.mxu0 %vm566_vm0, %v565_v1  ;;  %496 = vmatprep.mubr.msk.f32.mxu1 %vm224_vm2, %v222_v14  ;;  %s450_s26 = sld [smem:[#allocation2 + $0x5]]  ;;  %p545_p6 = scmp.lt.s32.totalorder %s429_s30, %s429_s30 }
  0x16   :  { %63 = vperm.xlu0 %504, %v44_v7   ;;  %s451_s27 = sld [smem:[#allocation2 + $0x6]]  ;;  %p546_p7 = scmp.lt.s32.totalorder %s540_s6, %s540_s6 }
  0x17   :  { %s452_s28 = sld [smem:[#allocation2 + $0x7]] }
  0x18   :  { %475 = vmatmul.mubr.msk.f32.gmra.mxu0 %vm71_vm1, %v35_v8  ;;  %53 = vperm.xlu1 %505, %v42_v9   ;;  %p547_p8 = por %p546_p7, %p545_p6 }
  0x19   :  { %477 = vmatprep.mubr.msk.f32.mxu0 %vm566_vm0, %v565_v1 }
  0x1a   :  { %48 = vperm.xlu0 %504, %v41_v10   ;;  %p548_p9 = pnand %p547_p8, %p541_p5 }
  0x1c   :  { %478 = vmatmul.mubr.msk.f32.gmra.mxu0 %vm71_vm1, %v36_v11 }
  0x1d   :  { %480 = vmatprep.mubr.msk.f32.mxu0 %vm566_vm0, %v565_v1 }
  0x20   :  { %481 = vmatmul.mubr.msk.f32.gmra.mxu0 %vm71_vm1, %v37_v12 }
  0x21   :  { %483 = vmatprep.mubr.msk.f32.mxu0 %vm566_vm0, %v565_v1 }
  0x24   :  { %484 = vmatmul.mubr.msk.f32.gmra.mxu0 %vm71_vm1, %v38_v13 }
  0x8d   :  { %v69_v15 = vpop.permute.xlu0 %68 }
  0x8f   :  { %v59_v16 = vpop.permute.xlu1 %58 }
  0x91   :  { %v64_v17 = vpop.permute.xlu0 %63 }
  0x93   :  { %v54_v20 = vpop.permute.xlu1 %53 }
  0x95   :  { %v49_v22 = vpop.permute.xlu0 %48 }
  0xd4   :  { %v153_v18 = vpop.f32.mrf.mxu0 }
  0xd5   :  { %v652_v26 = vadd.f32 %v153_v18, %v49_v22 }
  0xd6   :  { %v473_v19 = vpop.f32.mrf.mxu0 }
  0xd7   :  { %v182_v32 = vmul.f32 0.044715, %v652_v26  ;;  %v177_v14 = vmul.f32 0.5, %v652_v26 }
  0xd8   :  { %v158_v21 = vpop.f32.mrf.mxu0 }
  0xd9   :  { %v159_v24 = vadd.f32 %v158_v21, %v54_v20  ;;  %v187_v40 = vmul.f32 %v182_v32, %v652_v26 }
  0xda   :  { %v476_v23 = vpop.f32.mrf.mxu0 }
  0xdb   :  { %v183_v29 = vmul.f32 0.044715, %v159_v24  ;;  %v192_v50 = vmul.f32 %v187_v40, %v652_v26  ;;  %v178_v11 = vmul.f32 0.5, %v159_v24 }
  0xdc   :  { %v163_v25 = vpop.f32.mrf.mxu0 }
  0xdd   :  { %v164_v27 = vadd.f32 %v163_v25, %v59_v16  ;;  %v188_v36 = vmul.f32 %v183_v29, %v159_v24  ;;  %v197_v56 = vadd.f32 %v192_v50, %v652_v26  ;;  %v223_v16 = vld [vmem:[%s669_s3 + $0x8] sm:$0xff]  ;;  %v326_v26 = vlaneseq  ;;  %s363_s3 = sld [smem:[#allocation2]] }
  0xde   :  { %v479_v28 = vpop.f32.mrf.mxu0 }
  0xdf   :  { %v184_v30 = vmul.f32 0.044715, %v164_v27  ;;  %v193_v46 = vmul.f32 %v188_v36, %v159_v24  ;;  %v202_v59 = vmul.f32 0.7978846, %v197_v56  ;;  %v179_v8 = vmul.f32 0.5, %v164_v27 }
  0xe0   :  { %v168_v31 = vpop.f32.mrf.mxu0 }
  0xe1   :  { %v189_v33 = vmul.f32 %v184_v30, %v164_v27  ;;  %v169_v34 = vadd.f32 %v168_v31, %v64_v17  ;;  %v198_v53 = vadd.f32 %v193_v46, %v159_v24 }
  0xe2   :  { %v482_v35 = vpop.f32.mrf.mxu0 }
  0xe3   :  { %v185_v37 = vmul.f32 0.044715, %v169_v34  ;;  %v194_v39 = vmul.f32 %v189_v33, %v164_v27  ;;  %v203_v58 = vmul.f32 0.7978846, %v198_v53  ;;  %v180_v4 = vmul.f32 0.5, %v169_v34 }
  0xe4   :  { %v173_v38 = vpop.f32.mrf.mxu0 }
  0xe5   :  { %v190_v41 = vmul.f32 %v185_v37, %v169_v34  ;;  %v174_v42 = vadd.f32 %v173_v38, %v69_v15  ;;  %v199_v47 = vadd.f32 %v194_v39, %v164_v27  ;;  %v327_v27 = vshrl.u32 %v326_v26, 7 }
  0xe6   :  { %v485_v43 = vpop.f32.mrf.mxu0 }
  0xe7   :  { %v186_v44 = vmul.f32 0.044715, %v174_v42  ;;  %v195_v45 = vmul.f32 %v190_v41, %v169_v34  ;;  %v204_v54 = vmul.f32 0.7978846, %v199_v47  ;;  %v181_v63 = vmul.f32 0.5, %v174_v42 }
  0xe8   :  { %v328_v29 = vsub.s32 0, %v327_v27  ;;  %v346_v30 = vsub.s32 2, %v327_v27 }
  0xe9   :  { %v191_v48 = vmul.f32 %v186_v44, %v174_v42  ;;  %v200_v49 = vadd.f32 %v195_v45, %v169_v34 }
  0xeb   :  { %v196_v51 = vmul.f32 %v191_v48, %v174_v42  ;;  %v205_v52 = vmul.f32 0.7978846, %v200_v49 }
  0xed   :  { %v201_v55 = vadd.f32 %v196_v51, %v174_v42  ;;  %506 = vtanh.f32 %v205_v52 }
  0xee   :  { %508 = vtanh.f32 %v204_v54 }
  0xef   :  { %v206_v57 = vmul.f32 0.7978846, %v201_v55 }
  0xf1   :  { %510 = vtanh.f32 %v206_v57  ;;  %v364_v57 = vstv %s363_s3 }
  0xf2   :  { %512 = vtanh.f32 %v203_v58  ;;  %v373_v58 = vstv %s447_s23 }
  0xf3   :  { %514 = vtanh.f32 %v202_v59 }
  0xfa   :  { %v507_v60 = vpop.eup %506 }
  0xfb   :  { %v509_v61 = vpop.eup %508  ;;  %v215_v1 = vadd.f32 1.0, %v507_v60 }
  0xfc   :  { %v214_v5 = vadd.f32 1.0, %v509_v61  ;;  %v366_v61 = vstv %s445_s24 }
  0xfd   :  { %v220_v7 = vmul.f32 %v215_v1, %v180_v4 }
  0xfe   :  { %v511_v62 = vpop.eup %510  ;;  %v219_v10 = vmul.f32 %v214_v5, %v179_v8 }
  0xff   :  { %v216_v0 = vadd.f32 1.0, %v511_v62  ;;  %v513_v2 = vpop.eup %512  ;;  %v369_v62 = vstv %s446_s22 }
 0x100   :  { %v515_v6 = vpop.eup %514  ;;  %v213_v9 = vadd.f32 1.0, %v513_v2  ;;  %v387_v2 = vstv %s449_s25 }
 0x101   :  { %v221_v3 = vmul.f32 %v216_v0, %v181_v63  ;;  %v212_v12 = vadd.f32 1.0, %v515_v6  ;;  %v380_v63 = vstv %s448_s4  ;;  %v394_v6 = vstv %s450_s26 }
 0x102   :  { %v218_v13 = vmul.f32 %v213_v9, %v178_v11 }
 0x103   :  { %486 = vmatprep.subr.msk.mxu1 %vm231_vm3, %v221_v3  ;;  %v217_v15 = vmul.f32 %v212_v12, %v177_v14  ;;  %v408_v14 = vstv %s452_s28 }
 0x104   :  { %487 = vmatpush3.msk.msra.mxu1 %vm231_vm3, %v221_v3 }
 0x105   :  { %488 = vmatprep.subr.mxu1 %v220_v7 }
 0x106   :  { %489 = vmatpush3.msra.mxu1 %v220_v7 }
 0x107   :  { %490 = vmatprep.subr.mxu1 %v219_v10 }
 0x108   :  { %491 = vmatpush3.msra.mxu1 %v219_v10  ;;  %v401_v10 = vstv %s451_s27 }
 0x109   :  { %492 = vmatprep.subr.mxu1 %v218_v13 }
 0x10a   :  { %493 = vmatpush3.msra.mxu1 %v218_v13 }
 0x10b   :  { %494 = vmatprep.subr.mxu1 %v217_v15 }
 0x10c   :  { %495 = vmatpush3.msra.mxu1 %v217_v15 }
 0x10d   :  { %497 = vmatmul.mubr.msk.f32.vlgmr.msra.gmra.mxu1 %vm224_vm2, %v223_v16 }
 0x1cd   :  { %v498_v17 = vpop.f32.mrf.mxu1 }
 0x1ce   :  { %v315_v28 = vrot.slane %v498_v17, 4 }
 0x1cf   :  { %v301_v18 = vpop.f32.mrf.mxu1 }
 0x1d0   :  { %v311_v19 = vrot.slane %v301_v18, 4  ;;  %v317_v32 = vsub.f32 %v498_v17, %v315_v28 }
 0x1d2   :  { %v313_v20 = vmul.f32 %v311_v19, %v301_v18 }
 0x1d4   :  { %v319_v21 = vrot.slane %v313_v20, 1 }
 0x1d6   :  { %v321_v22 = vadd.f32 %v319_v21, %v313_v20 }
 0x1d8   :  { %v322_v23 = vmul.f32 1.442695, %v321_v22 }
 0x1da   :  { %516 = vpow2.f32 %v322_v23 }
 0x1e7   :  { %v517_v24 = vpop.eup %516 }
 0x1e8   :  { %v324_v25 = vadd.f32 1.0, %v517_v24 }
 0x1ea   :  { %518 = vrcp.f32 %v324_v25 }
 0x1f7   :  { %v519_v31 = vpop.eup %518 }
 0x1f8   :  { %v329_v33 = vrot.slane %v519_v31, %v328_v29  ;;  %v347_v34 = vrot.slane %v519_v31, %v346_v30 }
 0x1fa   :  { %v330_v35 = vmul.f32 %v329_v33, %v317_v32  ;;  %v348_v36 = vmul.f32 %v347_v34, %v317_v32 }
 0x1fc   :  { %v332_v37 = vrot.slane %v330_v35, 4  ;;  %v350_v38 = vrot.slane %v348_v36, 4 }
 0x1fe   :  { %v334_v39 = vadd.f32 %v498_v17, %v332_v37  ;;  %v352_v40 = vadd.f32 %v498_v17, %v350_v38 }
 0x200   :  { %v336_v41 = vmul.f32 0.044715, %v334_v39  ;;  %v354_v42 = vmul.f32 0.044715, %v352_v40  ;;  %v335_v53 = vmul.f32 0.5, %v334_v39  ;;  %v353_v55 = vmul.f32 0.5, %v352_v40 }
 0x202   :  { %v337_v43 = vmul.f32 %v336_v41, %v334_v39  ;;  %v355_v44 = vmul.f32 %v354_v42, %v352_v40 }
 0x204   :  { %v338_v45 = vmul.f32 %v337_v43, %v334_v39  ;;  %v356_v46 = vmul.f32 %v355_v44, %v352_v40 }
 0x206   :  { %v339_v47 = vadd.f32 %v338_v45, %v334_v39  ;;  %v357_v48 = vadd.f32 %v356_v46, %v352_v40 }
 0x208   :  { %v340_v49 = vmul.f32 0.7978846, %v339_v47  ;;  %v358_v50 = vmul.f32 0.7978846, %v357_v48 }
 0x20a   :  { %520 = vtanh.f32 %v340_v49 }
 0x20b   :  { %522 = vtanh.f32 %v358_v50 }
 0x217   :  { %v521_v51 = vpop.eup %520 }
 0x218   :  { %v523_v52 = vpop.eup %522  ;;  %v342_v54 = vadd.f32 1.0, %v521_v51 }
 0x219   :  { %v360_v56 = vadd.f32 1.0, %v523_v52 }
 0x21a   :  { %v343_v59 = vmul.f32 %v342_v54, %v335_v53 }
 0x21b   :  { %v361_v60 = vmul.f32 %v360_v56, %v353_v55 }
 0x21c   :  { %v365_v0 = vmul.f32 %v364_v57, %v343_v59  ;;  %v374_v1 = vmul.f32 %v373_v58, %v343_v59  ;;  %v388_v9 = vmul.f32 %v387_v2, %v343_v59  ;;  %v402_v17 = vmul.f32 %v401_v10, %v343_v59 }
 0x21d   :  { %v370_v4 = vmul.f32 %v369_v62, %v361_v60  ;;  %v381_v5 = vmul.f32 %v380_v63, %v361_v60  ;;  %v395_v13 = vmul.f32 %v394_v6, %v361_v60  ;;  %v409_v20 = vmul.f32 %v408_v14, %v361_v60 }
 0x21e   :  { %v367_v3 = vadd.f32 %v366_v61, %v365_v0  ;;  %v376_v8 = vrot.slane %v374_v1, 1  ;;  %v390_v16 = vrot.slane %v388_v9, 2  ;;  %v404_v22 = vrot.slane %v402_v17, 3 }
 0x21f   :  { %v383_v12 = vrot.slane %v381_v5, 1  ;;  %v397_v19 = vrot.slane %v395_v13, 2  ;;  %v411_v24 = vrot.slane %v409_v20, 3 }
 0x220   :  { %v371_v7 = vadd.f32 %v370_v4, %v367_v3 }
 0x222   :  { %v378_v11 = vadd.f32 %v376_v8, %v371_v7 }
 0x224   :  { %v385_v15 = vadd.f32 %v383_v12, %v378_v11 }
 0x226   :  { %v392_v18 = vadd.f32 %v390_v16, %v385_v15 }
 0x228   :  { %v399_v21 = vadd.f32 %v397_v19, %v392_v18 }
 0x22a   :  { %v406_v23 = vadd.f32 %v404_v22, %v399_v21 }
 0x22c   :  { %v413_v25 = vadd.f32 %v411_v24, %v406_v23 }
 0x22e   :  { %v414_v26 = vsub.f32 0.0, %v413_v25 }
 0x230   :  { %v415_v27 = vmul.f32 1.442695, %v414_v26 }
 0x232   :  { %524 = vpow2.f32 %v415_v27 }
 0x23f   :  { %v525_v28 = vpop.eup %524 }
 0x240   :  { %v417_v29 = vadd.f32 1.0, %v525_v28 }
 0x242   :  { %526 = vrcp.f32 %v417_v29 }
 0x24f   :  { %v527_v30 = vpop.eup %526 }
 0x250   :  { %419 = vst [vmem:[#allocation5 - $0x4] sm:$0x10] %v527_v30  ;;  %v420_v31 = vsub.f32 1.0, %v527_v30 }
 0x252   :  { %421 = vst [vmem:[#allocation5 - $0x3] sm:$0x10] %v420_v31 }
 0x253   :  { %551 = shalt.err (!%p548_p9)
}
 0x254   :  { %431 = dma.vmem_to_hbm [thread:$0]  %s429_s30, 32, %s671_s5, [#allocation3]  }
 0x255   :  { %562 = dma.done.wait [#allocation3], 32  }
 0x256   :  { %563 = vsyncadd [#allocation3], 4294967264 }
 0x257   :  { %435 = vsyncpa [#allocation3], 1 }
 0x258   :  { %436 = vsyncpa [#allocation4], 1 }

</bundles_post_ra>
